<compile_context>
chip_gen: v5e
topology: v5e:2x2
jax: 0.10.0
libtpu: 0.0.40
codegen_flags: <defaults>
</compile_context>

<pallas_src>
import functools

import jax
import jax.numpy as jnp
from jax.experimental import pallas as pl
from jax.experimental.pallas import tpu as pltpu


def _round_up(x, m):
    return ((x + m - 1) // m) * m


_K_COLLAPSE_MAX = 4096       # collapse the K grid dim when d_in_p fits in one block
_PALLAS_MIN_FLOPS = 1 << 20  # below this, XLA's fused dot wins on fixed overhead


# ---------------------------------------------------------------------------
# Kernels
# ---------------------------------------------------------------------------
def _linreg_kernel_fused(x_ref, w_ref, b_ref, o_ref):
    """2-D grid (i, j): whole K resident in VMEM -> one MXU dot + fused bias add."""
    x = x_ref[...].astype(w_ref.dtype)  # bf16 feed for the MXU, f32 accumulation below
    acc = jnp.dot(x, w_ref[...], preferred_element_type=jnp.float32)
    o_ref[...] = (acc + b_ref[...]).astype(o_ref.dtype)


def _linreg_kernel_kloop(x_ref, w_ref, b_ref, o_ref):
    """3-D grid (i, j, k): accumulate directly into the resident f32 output tile."""
    k = pl.program_id(2)

    @pl.when(k == 0)
    def _():
        # Initialize the output tile with the broadcast bias (no separate epilogue).
        o_ref[...] = jnp.broadcast_to(b_ref[...], o_ref.shape).astype(o_ref.dtype)

    x = x_ref[...].astype(w_ref.dtype)
    o_ref[...] += jnp.dot(x, w_ref[...],
                          preferred_element_type=jnp.float32).astype(o_ref.dtype)


# ---------------------------------------------------------------------------
# One-time parameter preparation (outside the per-call hot path)
# ---------------------------------------------------------------------------
def linreg_prepare_params(weight, bias, *, mxu_dtype=jnp.bfloat16):
    """Convert PyTorch nn.Linear params (d_out, d_in) / (d_out,) into a padded,
    pre-transposed (d_in_p, d_out_p) bf16 weight and a (1, d_out_p) f32 bias row."""
    d_out, d_in = weight.shape
    d_in_p = _round_up(d_in, 128)
    d_out_p = _round_up(d_out, 128)
    w_t = jnp.zeros((d_in_p, d_out_p), mxu_dtype)
    w_t = w_t.at[:d_in, :d_out].set(weight.T.astype(mxu_dtype))
    b_row = jnp.zeros((1, d_out_p), jnp.float32).at[0, :d_out].set(
        bias.astype(jnp.float32))
    return w_t, b_row


# ---------------------------------------------------------------------------
# Tile selection
# ---------------------------------------------------------------------------
def _pick_tiles(B, d_in_p, d_out_p):
    tm = min(512, _round_up(B, 8))     # sublane-aligned M tile
    tn = min(512, d_out_p)             # lane-aligned N tile (mult. of 256 when >= 512)

    if d_in_p <= _K_COLLAPSE_MAX:
        tk = d_in_p                    # collapse K: no reduction grid dim at all
    else:
        tk = 128                       # K-loop path: tk must divide d_in_p exactly
        for cand in (2048, 1024, 512, 256):
            if d_in_p % cand == 0:
                tk = cand
                break

    # Give v7x's two TensorCores at least two parallel tiles when the shape allows.
    if pl.cdiv(B, tm) * pl.cdiv(d_out_p, tn) < 2:
        if d_out_p // 128 >= 2:
            tn = _round_up(d_out_p // 2, 128)
        elif _round_up(B, 8) // 8 >= 2:
            tm = _round_up(pl.cdiv(B, 2), 8)
    return tm, tn, tk


# ---------------------------------------------------------------------------
# Forward
# ---------------------------------------------------------------------------
@functools.partial(jax.jit,
                   static_argnames=("channel_num", "timepoint_num", "use_pallas"))
def linreg_flatten_forward(x, w_padded, b_padded, channel_num, timepoint_num,
                           *, use_pallas=None):
    """
    x:        (B, harmonic_num, timepoint_num) float32
    w_padded: (d_in_p, d_out_p) bf16 (or f32) -- from linreg_prepare_params
    b_padded: (1, d_out_p) f32
    returns   (B, channel_num, timepoint_num) in x.dtype
    """
    B = x.shape[0]
    d_in = x.shape[1] * x.shape[2]
    d_out = channel_num * timepoint_num
    d_in_p, d_out_p = w_padded.shape

    x_flat = x.reshape(B, d_in)  # nn.Flatten(): free metadata reshape (row-major)

    flops = 2 * B * d_in * d_out
    if use_pallas is None:
        use_pallas = flops >= _PALLAS_MIN_FLOPS

    if not use_pallas:
        # Toy shapes: padding/tiling + pallas_call fixed overhead dominates; let XLA fuse.
        out = (jnp.dot(x_flat.astype(w_padded.dtype), w_padded[:d_in, :d_out],
                       preferred_element_type=jnp.float32) + b_padded[0, :d_out])
        return out.astype(x.dtype).reshape(B, channel_num, timepoint_num)

    # Pad ONLY the K axis, and only when needed, so valid rows never multiply stale
    # out-of-bounds K columns.  B is NOT padded: Pallas clamps the partial M block and
    # never writes its out-of-range rows back.
    if d_in != d_in_p:
        x_flat = jnp.pad(x_flat, ((0, 0), (0, d_in_p - d_in)))

    tm, tn, tk = _pick_tiles(B, d_in_p, d_out_p)
    grid_m = pl.cdiv(B, tm)
    grid_n = pl.cdiv(d_out_p, tn)
    grid_k = pl.cdiv(d_in_p, tk)

    # Truthful cost estimate: real FLOPs, bytes including tiling re-reads.
    x_bytes = x_flat.size * x_flat.dtype.itemsize
    w_bytes = w_padded.size * w_padded.dtype.itemsize
    b_bytes = b_padded.size * b_padded.dtype.itemsize
    out_bytes = B * d_out_p * 4
    cost = pl.CostEstimate(
        flops=flops,
        transcendentals=0,
        bytes_accessed=x_bytes * grid_n + w_bytes * grid_m + b_bytes * grid_m
                       + out_bytes,
    )

    # Explicit VMEM budget: double/triple-buffered tiles + headroom, capped so it still
    # fits v7x's 64 MiB physical VMEM (v5e/v6e have 128 MiB).
    vmem_bytes = (2 * tm * tk * x_flat.dtype.itemsize
                  + 3 * tk * tn * w_padded.dtype.itemsize
                  + 2 * tn * 4
                  + 2 * tm * tn * 4)
    vmem_limit = int(min(max(vmem_bytes + (4 << 20), 32 << 20), 48 << 20))

    if grid_k == 1:
        kernel = _linreg_kernel_fused
        grid = (grid_m, grid_n)
        in_specs = [
            pl.BlockSpec((tm, tk), lambda i, j: (i, 0)),   # x tile (all of K)
            pl.BlockSpec((tk, tn), lambda i, j: (0, j)),   # W^T tile (bf16)
            pl.BlockSpec((1, tn), lambda i, j: (0, j)),    # bias row
        ]
        out_spec = pl.BlockSpec((tm, tn), lambda i, j: (i, j))
        dim_sem = ("parallel", "parallel")
    else:
        kernel = _linreg_kernel_kloop
        grid = (grid_m, grid_n, grid_k)
        in_specs = [
            pl.BlockSpec((tm, tk), lambda i, j, k: (i, k)),
            # Largest per-step DMA: triple-buffer it to hide DMA latency.
            pl.BlockSpec((tk, tn), lambda i, j, k: (k, j),
                         pipeline_mode=pl.Buffered(3)),
            pl.BlockSpec((1, tn), lambda i, j, k: (0, j)),  # K-invariant bias
        ]
        out_spec = pl.BlockSpec((tm, tn), lambda i, j, k: (i, j))
        dim_sem = ("parallel", "parallel", "arbitrary")

    out_flat = pl.pallas_call(
        kernel,
        out_shape=jax.ShapeDtypeStruct((B, d_out_p), jnp.float32),
        grid_spec=pltpu.PrefetchScalarGridSpec(
            num_scalar_prefetch=0,
            grid=grid,
            in_specs=in_specs,
            out_specs=out_spec,
        ),
        compiler_params=pltpu.CompilerParams(
            dimension_semantics=dim_sem,
            vmem_limit_bytes=vmem_limit,
        ),
        cost_estimate=cost,
    )(x_flat, w_padded, b_padded)

    return out_flat[:, :d_out].astype(x.dtype).reshape(B, channel_num, timepoint_num)


# ---------------------------------------------------------------------------
# Demo / correctness checks
# ---------------------------------------------------------------------------
if __name__ == "__main__":
    root_key = jax.random.PRNGKey(0)

    def make_case(key, batch, harmonic, channel, timepoint):
        kx, kw, kb = jax.random.split(key, 3)
        d_in = harmonic * timepoint
        d_out = channel * timepoint
        x = jax.random.normal(kx, (batch, harmonic, timepoint), dtype=jnp.float32)
        bound = 1.0 / (d_in ** 0.5)  # PyTorch nn.Linear init convention
        weight = jax.random.uniform(kw, (d_out, d_in), minval=-bound, maxval=bound,
                                    dtype=jnp.float32)
        bias = jax.random.uniform(kb, (d_out,), minval=-bound, maxval=bound,
                                  dtype=jnp.float32)
        return x, weight, bias

    def run_case(key, batch, harmonic, channel, timepoint, use_pallas):
        x, weight, bias = make_case(key, batch, harmonic, channel, timepoint)
        w_p, b_p = linreg_prepare_params(weight, bias)   # one-time prep (pad+T+bf16)
        out = linreg_flatten_forward(x, w_p, b_p,
                                     channel_num=channel, timepoint_num=timepoint,
                                     use_pallas=use_pallas)
        out = jax.block_until_ready(out)
        ref = (x.reshape(batch, -1) @ weight.T + bias).reshape(batch, channel, timepoint)
        assert out.shape == ref.shape
        # bf16 MXU inputs with f32 accumulation vs pure-f32 reference.
        assert jnp.allclose(out, ref, atol=5e-2, rtol=5e-2), (
            float(jnp.max(jnp.abs(out - ref))))

    k0, k1, k2 = jax.random.split(root_key, 3)
    # 1) Aligned small case (B mult of 8, d_in/d_out mult of 128): no pads, Pallas path.
    run_case(k0, batch=8, harmonic=4, channel=4, timepoint=32, use_pallas=True)
    # 2) Unaligned small case: partial last M block + K-axis zero-pad + split N tiles.
    run_case(k1, batch=10, harmonic=6, channel=5, timepoint=40, use_pallas=True)
    # 3) Toy case (module's demo size): auto-dispatch falls back to XLA's fused dot.
    run_case(k2, batch=2, harmonic=4, channel=3, timepoint=8, use_pallas=None)

    print("KERNEL_OK")
</pallas_src>

<mosaic_0001>
module attributes {stable_mosaic.version = 11 : i64} {
  func.func @_linreg_kernel_fused(%arg0: i32, %arg1: i32, %arg2: memref<8x128xf32, #tpu.memory_space<vmem>>, %arg3: memref<128x128xbf16, #tpu.memory_space<vmem>>, %arg4: memref<1x128xf32, #tpu.memory_space<vmem>>, %arg5: memref<8x128xf32, #tpu.memory_space<vmem>>) attributes {dimension_semantics = [#tpu.dimension_semantics<parallel>, #tpu.dimension_semantics<parallel>], iteration_bounds = array<i64: 1, 1>, scalar_prefetch = 0 : i64, scratch_operands = 0 : i64, tpu.core_type = #tpu.core_type<tc>, window_params = [{transform_indices = @transform_0, window_bounds = array<i64: 8, 128>}, {transform_indices = @transform_1, window_bounds = array<i64: 128, 128>}, {transform_indices = @transform_2, window_bounds = array<i64: 1, 128>}, {transform_indices = @transform_3, window_bounds = array<i64: 8, 128>}]} {
    %c0 = arith.constant 0 : index
    %c0_0 = arith.constant 0 : index
    %0 = vector.load %arg2[%c0, %c0_0] : memref<8x128xf32, #tpu.memory_space<vmem>>, vector<8x128xf32>
    %1 = arith.truncf %0 : vector<8x128xf32> to vector<8x128xbf16>
    %c0_1 = arith.constant 0 : index
    %c0_2 = arith.constant 0 : index
    %2 = vector.load %arg3[%c0_1, %c0_2] : memref<128x128xbf16, #tpu.memory_space<vmem>>, vector<128x128xbf16>
    %cst = arith.constant dense<0.000000e+00> : vector<8x128xf32>
    %3 = tpu.matmul %1, %2, %cst {dimension_numbers = #tpu.dot_dimension_numbers<[1], [0], [0], [1], [0, 0, 1, 1], [], []>} : vector<8x128xbf16>, vector<128x128xbf16>, vector<8x128xf32> -> vector<8x128xf32>
    %c0_3 = arith.constant 0 : index
    %c0_4 = arith.constant 0 : index
    %4 = vector.load %arg4[%c0_3, %c0_4] : memref<1x128xf32, #tpu.memory_space<vmem>>, vector<1x128xf32>
    %5 = vector.broadcast %4 : vector<1x128xf32> to vector<8x128xf32>
    %6 = arith.addf %3, %5 : vector<8x128xf32>
    %c0_5 = arith.constant 0 : index
    %c0_6 = arith.constant 0 : index
    %7 = vector.load %arg5[%c0_5, %c0_6] : memref<8x128xf32, #tpu.memory_space<vmem>>, vector<8x128xf32>
    tpu.vector_store %arg5[%c0_5, %c0_6], %6 {strides = array<i32>} : memref<8x128xf32, #tpu.memory_space<vmem>>, vector<8x128xf32>,
    return
  }
  func.func @transform_0(%arg0: i32, %arg1: i32) -> (i32, i32) {
    %c0_i32 = arith.constant 0 : i32
    %c0_i32_0 = arith.constant 0 : i32
    return %arg0, %c0_i32 : i32, i32
  }
  func.func @transform_1(%arg0: i32, %arg1: i32) -> (i32, i32) {
    %c0_i32 = arith.constant 0 : i32
    %c0_i32_0 = arith.constant 0 : i32
    return %c0_i32, %arg1 : i32, i32
  }
  func.func @transform_2(%arg0: i32, %arg1: i32) -> (i32, i32) {
    %c0_i32 = arith.constant 0 : i32
    %c0_i32_0 = arith.constant 0 : i32
    return %c0_i32, %arg1 : i32, i32
  }
  func.func @transform_3(%arg0: i32, %arg1: i32) -> (i32, i32) {
    %c0_i32 = arith.constant 0 : i32
    return %arg0, %arg1 : i32, i32
  }
}

</mosaic_0001>

<bundles_post_ra>
// kernel: linreg_flatten_forward.1
= control target key start
LH: loop header
LB: loop body
LE: loop exit
PB: predicated region body
PF: predicated region fallthrough
CT: control target
= control target key end

     0   :  { %8 = vsyncpa [#allocation3], 0  ;;  %s189_s15 = smov [#allocation2]   ;;  %s190_s17 = smov 64   ;;  %s224_s0 = inlined_call_operand.vmem [shape: f32[8,128], index: 0, kind: input, shape index: {}]   ;;  %s225_s1 = inlined_call_operand.hbm [shape: bf16[128,128], index: 1, kind: input, shape index: {}]   ;;  %s226_s2 = inlined_call_operand.vmem [shape: f32[1,128], index: 2, kind: input, shape index: {}]   ;;  %s227_s3 = inlined_call_operand.vmem [shape: f32[8,128], index: 3, kind: output, shape index: {}]  }
   0x1   :  { %s15_s14 = sshll.u32 %s225_s1, 4  ;;  %s17_s16 = sshll.u32 %s189_s15, 4  ;;  %s16_s14 = int_to_ptr.hbm [resolvable:$true] %s15_s14  ;;  %s18_s16 = int_to_ptr.vmem [resolvable:$true] %s17_s16 }
   0x2   :  { %s191_s18 = smov 4  }
   0x3   :  { %23 = dma.hbm_to_vmem [thread:$0]  %s16_s14, 1024, %s18_s16, [#allocation3], %s190_s17, %s190_s17, %s191_s18  }
   0x4   :  { %187 = dma.done.wait [#allocation3], 1024  }
   0x5   :  { %188 = vsyncadd [#allocation3], 4294966272  ;;  %v158_v0 = vld [vmem:[#allocation2 + $0x38] sm:$0xff]  ;;  %v157_v1 = vld [vmem:[#allocation2 + $0x30] sm:$0xff] }
   0x6   :  { %100 = vmatpush.bf16.msra.mxu0 %v158_v0  ;;  %v156_v2 = vld [vmem:[#allocation2 + $0x28] sm:$0xff]  ;;  %v155_v3 = vld [vmem:[#allocation2 + $0x20] sm:$0xff]  ;;  %v154_v4 = vld [vmem:[#allocation2 + $0x18] sm:$0xff] }
   0x7   :  { %v153_v5 = vld [vmem:[#allocation2 + $0x10] sm:$0xff]  ;;  %v152_v6 = vld [vmem:[#allocation2 + $0x8] sm:$0xff]  ;;  %v151_v7 = vld [vmem:[#allocation2] sm:$0xff] }
   0x8   :  { %v30_v8 = vld [vmem:[%s224_s0] sm:$0xff] }
   0x9   :  { %v31_v9 = vpack.c.bf16 %v30_v8, %v30_v8  ;;  %v162_v10 = vld [vmem:[%s226_s2] ss:$0 sm:$0xff] }
   0xa   :  { %101 = vmatpush.bf16.msra.mxu0 %v157_v1 }
   0xe   :  { %102 = vmatpush.bf16.msra.mxu0 %v156_v2 }
  0x12   :  { %103 = vmatpush.bf16.msra.mxu0 %v155_v3 }
  0x16   :  { %104 = vmatpush.bf16.msra.mxu0 %v154_v4 }
  0x1a   :  { %105 = vmatpush.bf16.msra.mxu0 %v153_v5 }
  0x1e   :  { %106 = vmatpush.bf16.msra.mxu0 %v152_v6 }
  0x22   :  { %107 = vmatpush.bf16.msra.mxu0 %v151_v7 }
  0x25   :  { %108 = vmatmul.bf16.vlgmr.msra.gmra.mxu0 %v31_v9 }
  0xa2   :  { %v109_v11 = vpop.f32.mrf.mxu0 }
  0xa3   :  { %v110_v12 = vadd.f32 %v162_v10, %v109_v11 }
  0xa5   :  { %113 = vst [vmem:[%s227_s3] sm:$0xff] %v110_v12 }
  0xaa   :  { %v111_v13 = vpop.f32.mrf.mxu0 }
  0xab   :  { %118 = vsyncpa [#allocation3], 1 }

</bundles_post_ra>
